<compile_context>
chip_gen: v5e
topology: v5e:2x2
jax: 0.10.0
libtpu: 0.0.40
codegen_flags: <defaults>
</compile_context>

<pallas_src>
import functools
import math

import jax
import jax.numpy as jnp
from jax.experimental import pallas as pl
from jax.experimental.pallas import tpu as pltpu


def _round_up(x, m):
    return (x + m - 1) // m * m


def _layer_norm(h, gamma, beta, eps=1e-5):
    mean = jnp.mean(h, axis=-1, keepdims=True)
    var = jnp.mean((h - mean) ** 2, axis=-1, keepdims=True)
    return (h - mean) * jax.lax.rsqrt(var + eps) * gamma + beta


# --------------------------------------------------------------------------- #
# Kernel 1: Q/K/V projection into head-major (B, H, S, dh) bf16 layout.
# --------------------------------------------------------------------------- #
def _qkv_proj_kernel(x_ref, wq_ref, bq_ref, wk_ref, bk_ref, wv_ref, bv_ref,
                     q_ref, k_ref, v_ref, *, num_heads):
    f32, bf16 = jnp.float32, jnp.bfloat16
    TS, D = x_ref.shape[1], x_ref.shape[2]
    dh = D // num_heads

    xb = x_ref[0].astype(bf16)                                       # (TS, D)
    for w_ref, b_ref, o_ref in ((wq_ref, bq_ref, q_ref),
                                (wk_ref, bk_ref, k_ref),
                                (wv_ref, bv_ref, v_ref)):
        t = jnp.dot(xb, w_ref[...], preferred_element_type=f32) + b_ref[...]
        tb = t.astype(bf16)                                          # (TS, D)
        # Head split done ONCE per token here so the attention kernel's head
        # loop only needs free leading-axis indexing.
        for h in range(num_heads):
            o_ref[0, h] = tb[:, h * dh:(h + 1) * dh]                 # (TS, dh)


# --------------------------------------------------------------------------- #
# Kernel 2: attention + output projection + LN1 + FFN + LN2, per (b, q-tile).
# --------------------------------------------------------------------------- #
def _attention_ffn_kernel(
    xq_ref, q_ref, k_ref, v_ref, mcol_ref, mrow_ref,
    wo_ref, bo_ref, g1_ref, be1_ref,
    w1_ref, b1_ref, w2_ref, b2_ref, g2_ref, be2_ref,
    out_ref, *, num_heads,
):
    f32, bf16 = jnp.float32, jnp.bfloat16
    TQ, D = xq_ref.shape[1], xq_ref.shape[2]
    S = k_ref.shape[2]
    H = num_heads

    x = xq_ref[0]                                                    # (TQ, D) f32 residual
    # Hoisted broadcasts (JAX does not CSE broadcast_in_dim, so do each once).
    mcol = pl.broadcast_to(mcol_ref[0], (TQ, D))                     # output/residual mask
    bias = pl.broadcast_to(
        jnp.where(mrow_ref[0] > 0.0, f32(0.0), f32(-1e9)), (TQ, S))  # additive key mask

    # ---- multi-head self-attention (mask_future=False; scale folded in wq) ----
    heads = []
    for h in range(H):                                               # H static -> unrolled
        s = jax.lax.dot_general(
            q_ref[0, h], k_ref[0, h],                                # (TQ,dh) x (S,dh)
            dimension_numbers=(((1,), (1,)), ((), ())),
            preferred_element_type=f32)                              # (TQ, S)
        s = s + bias
        s = s - jnp.max(s, axis=-1, keepdims=True)
        p = jnp.exp(s)
        p = p * pl.reciprocal(jnp.sum(p, axis=-1, keepdims=True), approx=True)
        heads.append(jnp.dot(p.astype(bf16), v_ref[0, h],
                             preferred_element_type=f32))            # (TQ, dh)
    # One lane-concat, then a single K=D output-projection matmul (full MXU depth).
    attn = jnp.concatenate(heads, axis=-1).astype(bf16)              # (TQ, D)
    y = jnp.dot(attn, wo_ref[...], preferred_element_type=f32) + bo_ref[...]

    y = y * mcol                                                     # dropout = identity (eval)
    x1 = _layer_norm(x + y, g1_ref[...], be1_ref[...])

    # ---- position-wise feed forward (bf16 intermediate, fused ReLU) ----
    hdn = jnp.maximum(
        jnp.dot(x1.astype(bf16), w1_ref[...], preferred_element_type=f32) + b1_ref[...],
        0.0).astype(bf16)                                            # (TQ, F) bf16
    ff = jnp.dot(hdn, w2_ref[...], preferred_element_type=f32) + b2_ref[...]
    ff = ff * mcol
    x2 = _layer_norm(x1 + ff, g2_ref[...], be2_ref[...])

    out_ref[0] = x2 * mcol


# --------------------------------------------------------------------------- #
# Generation-aware sizing helpers.
# --------------------------------------------------------------------------- #
def _vmem_capacity_bytes():
    try:
        return int(pltpu.get_tpu_info().vmem_capacity_bytes)
    except Exception:
        return 64 * 1024 * 1024       # conservative (v7x-sized) default


def _main_kernel_vmem_bytes(tq, s_pad, D, F):
    bf, f4 = 2, 4
    weights = (D * D + 2 * D * F) * bf + (6 * D + F) * f4            # single-buffered weights
    kv = 2 * (2 * s_pad * D * bf)                                    # K, V blocks (x2 buffers)
    q = 2 * tq * D * bf                                              # Q tile (x2 buffers)
    io = 2 * 2 * tq * D * f4 + 2 * tq * f4 + 2 * s_pad * f4          # x / out tiles + masks
    live = 3 * tq * s_pad * f4 + tq * F * (bf + f4) + 6 * tq * D * f4
    return weights + kv + q + io + live


def _pick_query_tile(S, D, F, vmem_cap):
    """(padded seq length, query tile) — bigger tiles on 128 MiB (v5e/v6e) parts."""
    if S <= 256:
        s8 = _round_up(S, 8)          # one sublane-aligned tile covers the sequence
        return s8, s8
    cands = (512, 256, 128) if vmem_cap >= 100 * 1024 * 1024 else (256, 128)
    for tq in cands:
        s_pad = _round_up(S, tq)
        if _main_kernel_vmem_bytes(tq, s_pad, D, F) <= int(0.6 * vmem_cap):
            return s_pad, tq
    return _round_up(S, 128), 128


# --------------------------------------------------------------------------- #
# pallas_call builders / wrapper.
# --------------------------------------------------------------------------- #
def _qkv_projection(x, wq, bq, wk, bk, wv, bv, *, num_heads, seq_tile, vmem_limit):
    B, S, D = x.shape
    H = num_heads
    dh = D // H
    ns = S // seq_tile

    def rep(shape):
        return pl.BlockSpec(shape, lambda b, si: (0, 0))

    out_sd = jax.ShapeDtypeStruct((B, H, S, dh), jnp.bfloat16)
    out_spec = pl.BlockSpec((1, H, seq_tile, dh), lambda b, si: (b, 0, si, 0))
    cost = pl.CostEstimate(
        flops=6 * B * S * D * D, transcendentals=0,
        bytes_accessed=B * S * D * 4 + 3 * D * D * 2 + 3 * B * S * D * 2)

    return pl.pallas_call(
        functools.partial(_qkv_proj_kernel, num_heads=H),
        out_shape=(out_sd, out_sd, out_sd),
        grid=(B, ns),
        in_specs=[
            pl.BlockSpec((1, seq_tile, D), lambda b, si: (b, si, 0)),
            rep((D, D)), rep((1, D)),
            rep((D, D)), rep((1, D)),
            rep((D, D)), rep((1, D)),
        ],
        out_specs=(out_spec, out_spec, out_spec),
        compiler_params=pltpu.CompilerParams(
            dimension_semantics=("parallel", "parallel"),
            vmem_limit_bytes=vmem_limit,
        ),
        cost_estimate=cost,
    )(x, wq, bq, wk, bk, wv, bv)


def _build_layer_call(B, S, D, F, H, TQ, nq, vmem_limit, cost, single_buffer_weights):
    dh = D // H

    def rep(shape):
        # Resident parameter blocks never change across the grid: single-buffer
        # them to halve their VMEM footprint (critical on v7x's 64 MiB).
        if single_buffer_weights:
            return pl.BlockSpec(shape, lambda b, qi: (0, 0),
                                pipeline_mode=pl.Buffered(1))
        return pl.BlockSpec(shape, lambda b, qi: (0, 0))

    in_specs = [
        pl.BlockSpec((1, TQ, D), lambda b, qi: (b, qi, 0)),          # x residual tile (f32)
        pl.BlockSpec((1, H, TQ, dh), lambda b, qi: (b, 0, qi, 0)),   # q (head-major, bf16)
        pl.BlockSpec((1, H, S, dh), lambda b, qi: (b, 0, 0, 0)),     # k (full seq, bf16)
        pl.BlockSpec((1, H, S, dh), lambda b, qi: (b, 0, 0, 0)),     # v (full seq, bf16)
        pl.BlockSpec((1, TQ, 1), lambda b, qi: (b, qi, 0)),          # mask, column layout
        pl.BlockSpec((1, 1, S), lambda b, qi: (b, 0, 0)),            # mask, row layout
        rep((D, D)), rep((1, D)),                                    # wo, bo
        rep((1, D)), rep((1, D)),                                    # ln1 gamma, beta
        rep((D, F)), rep((1, F)),                                    # ff w1, b1
        rep((F, D)), rep((1, D)),                                    # ff w2, b2
        rep((1, D)), rep((1, D)),                                    # ln2 gamma, beta
    ]
    return pl.pallas_call(
        functools.partial(_attention_ffn_kernel, num_heads=H),
        out_shape=jax.ShapeDtypeStruct((B, S, D), jnp.float32),
        grid=(B, nq),
        in_specs=in_specs,
        out_specs=pl.BlockSpec((1, TQ, D), lambda b, qi: (b, qi, 0)),
        compiler_params=pltpu.CompilerParams(
            # No state is carried across grid steps -> both axes parallel
            # (both TensorCores used on v7x even when B == 1).
            dimension_semantics=("parallel", "parallel"),
            vmem_limit_bytes=vmem_limit,
        ),
        cost_estimate=cost,
    )


def base_transformer_layer(x, attention_mask, params, *, num_heads):
    """x: (B, S, D) float32; attention_mask: (B, S) with 1 = valid token."""
    B, S, D = x.shape
    F = params["w1"].shape[1]
    H = num_heads
    assert D % H == 0
    dh = D // H
    bf16 = jnp.bfloat16

    vmem_cap = _vmem_capacity_bytes()
    vmem_limit = int(0.85 * vmem_cap)          # ~54 MiB on v7x, ~108 MiB on v5e/v6e
    S_pad, TQ = _pick_query_tile(S, D, F, vmem_cap)
    nq = S_pad // TQ

    maskf = attention_mask.astype(jnp.float32)
    if S_pad != S:
        # Pad the sequence to the tile size; padded rows carry mask 0 so they are
        # masked out as keys and their outputs are zeroed (then sliced away).
        x = jnp.pad(x, ((0, 0), (0, S_pad - S), (0, 0)))
        maskf = jnp.pad(maskf, ((0, 0), (0, S_pad - S)))
    mcol = maskf[..., None]                    # (B, S_pad, 1) output / residual masking
    mrow = maskf[:, None, :]                   # (B, 1, S_pad) key masking

    # bf16 MXU weights; softmax scale 1/sqrt(dh) folded into wq/bq (zero kernel cost).
    scale = 1.0 / math.sqrt(dh)
    wq = (params["wq"] * scale).astype(bf16)
    bq = params["bq"] * scale
    wk = params["wk"].astype(bf16)
    wv = params["wv"].astype(bf16)
    wo = params["wo"].astype(bf16)
    w1 = params["w1"].astype(bf16)
    w2 = params["w2"].astype(bf16)

    q, k, v = _qkv_projection(x, wq, bq, wk, params["bk"], wv, params["bv"],
                              num_heads=H, seq_tile=TQ, vmem_limit=vmem_limit)

    flops = 2 * B * S_pad * D * (D + 2 * F) + 4 * B * S_pad * S_pad * D
    transcendentals = B * H * S_pad * S_pad
    bytes_accessed = (2 * B * S_pad * D) * 4 + 3 * B * S_pad * D * 2 \
        + (D * D + 2 * D * F) * 2 + (2 * B * S_pad) * 4 + (6 * D + F) * 4
    cost = pl.CostEstimate(flops=flops, transcendentals=transcendentals,
                           bytes_accessed=bytes_accessed)

    args = (x, q, k, v, mcol, mrow,
            wo, params["bo"], params["g1"], params["be1"],
            w1, params["b1"], w2, params["b2"],
            params["g2"], params["be2"])

    try:
        out = _build_layer_call(B, S_pad, D, F, H, TQ, nq, vmem_limit, cost, True)(*args)
    except Exception:
        # pl.Buffered(1) (single-buffered resident weights) not supported on this
        # jax/Mosaic build -> fall back to default double-buffered weight blocks.
        out = _build_layer_call(B, S_pad, D, F, H, TQ, nq, vmem_limit, cost, False)(*args)

    return out[:, :S, :] if S_pad != S else out


# --------------------------------------------------------------------------- #
# Pure-JAX f32 reference mirroring the PyTorch forward (eval mode).
# --------------------------------------------------------------------------- #
def reference_layer(x, attention_mask, params, *, num_heads):
    B, S, D = x.shape
    dh = D // num_heads
    m = attention_mask.astype(jnp.float32)[..., None]   # (B, S, 1)

    q = x @ params["wq"] + params["bq"]
    k = x @ params["wk"] + params["bk"]
    v = x @ params["wv"] + params["bv"]

    def split(t):
        return t.reshape(B, S, num_heads, dh).transpose(0, 2, 1, 3)   # (B,H,S,dh)

    qh, kh, vh = split(q), split(k), split(v)
    scores = jnp.einsum("bhqd,bhkd->bhqk", qh, kh) / jnp.sqrt(jnp.float32(dh))
    key_mask = attention_mask[:, None, None, :] > 0
    scores = jnp.where(key_mask, scores, -1e9)
    p = jax.nn.softmax(scores, axis=-1)
    attn = jnp.einsum("bhqk,bhkd->bhqd", p, vh).transpose(0, 2, 1, 3).reshape(B, S, D)
    y = attn @ params["wo"] + params["bo"]
    y = y * m
    x1 = _layer_norm(x + y, params["g1"], params["be1"])
    ff = jnp.maximum(x1 @ params["w1"] + params["b1"], 0.0) @ params["w2"] + params["b2"]
    ff = ff * m
    x2 = _layer_norm(x1 + ff, params["g2"], params["be2"])
    return x2 * m


def init_params(key, input_dim, feature_dim):
    D, F = input_dim, feature_dim
    ks = jax.random.split(key, 6)
    scale = 0.1
    return {
        "wq": scale * jax.random.normal(ks[0], (D, D), jnp.float32),
        "bq": jnp.zeros((1, D), jnp.float32),
        "wk": scale * jax.random.normal(ks[1], (D, D), jnp.float32),
        "bk": jnp.zeros((1, D), jnp.float32),
        "wv": scale * jax.random.normal(ks[2], (D, D), jnp.float32),
        "bv": jnp.zeros((1, D), jnp.float32),
        "wo": scale * jax.random.normal(ks[3], (D, D), jnp.float32),
        "bo": jnp.zeros((1, D), jnp.float32),
        "g1": jnp.ones((1, D), jnp.float32),
        "be1": jnp.zeros((1, D), jnp.float32),
        "w1": scale * jax.random.normal(ks[4], (D, F), jnp.float32),
        "b1": jnp.zeros((1, F), jnp.float32),
        "w2": scale * jax.random.normal(ks[5], (F, D), jnp.float32),
        "b2": jnp.zeros((1, D), jnp.float32),
        "g2": jnp.ones((1, D), jnp.float32),
        "be2": jnp.zeros((1, D), jnp.float32),
    }


if __name__ == "__main__":
    # TODO(synk): dropout is only active in training mode; implemented here as identity (eval).
    B, S, D, H, F = 2, 8, 32, 4, 64
    key = jax.random.PRNGKey(0)
    kx, kp = jax.random.split(key)
    x = jax.random.normal(kx, (B, S, D), jnp.float32)
    # attention mask: last 2 tokens of batch element 1 are padding
    attention_mask = jnp.array(
        [[1] * S, [1] * (S - 2) + [0, 0]], dtype=jnp.int32
    )
    params = init_params(kp, D, F)

    out = base_transformer_layer(x, attention_mask, params, num_heads=H)
    out = jax.block_until_ready(out)

    ref = reference_layer(x, attention_mask, params, num_heads=H)
    assert out.shape == (B, S, D)
    # bf16 MXU operands vs f32 reference -> loosened tolerance
    assert jnp.allclose(out, ref, atol=5e-2, rtol=5e-2), "mismatch vs JAX reference"
    print("KERNEL_OK")
</pallas_src>

<mosaic_0001>
module attributes {stable_mosaic.version = 11 : i64} {
  func.func @_qkv_proj_kernel(%arg0: i32, %arg1: i32, %arg2: memref<1x8x32xf32, #tpu.memory_space<vmem>>, %arg3: memref<32x32xbf16, #tpu.memory_space<vmem>>, %arg4: memref<1x32xf32, #tpu.memory_space<vmem>>, %arg5: memref<32x32xbf16, #tpu.memory_space<vmem>>, %arg6: memref<1x32xf32, #tpu.memory_space<vmem>>, %arg7: memref<32x32xbf16, #tpu.memory_space<vmem>>, %arg8: memref<1x32xf32, #tpu.memory_space<vmem>>, %arg9: memref<1x4x8x8xbf16, #tpu.memory_space<vmem>>, %arg10: memref<1x4x8x8xbf16, #tpu.memory_space<vmem>>, %arg11: memref<1x4x8x8xbf16, #tpu.memory_space<vmem>>) attributes {dimension_semantics = [#tpu.dimension_semantics<parallel>, #tpu.dimension_semantics<parallel>], iteration_bounds = array<i64: 2, 1>, scalar_prefetch = 0 : i64, scratch_operands = 0 : i64, tpu.core_type = #tpu.core_type<tc>, window_params = [{transform_indices = @transform_0, window_bounds = array<i64: 1, 8, 32>}, {pipeline_mode = #tpu.pipeline_mode<synchronous>, transform_indices = @transform_1, window_bounds = array<i64: 32, 32>}, {pipeline_mode = #tpu.pipeline_mode<synchronous>, transform_indices = @transform_2, window_bounds = array<i64: 1, 32>}, {pipeline_mode = #tpu.pipeline_mode<synchronous>, transform_indices = @transform_3, window_bounds = array<i64: 32, 32>}, {pipeline_mode = #tpu.pipeline_mode<synchronous>, transform_indices = @transform_4, window_bounds = array<i64: 1, 32>}, {pipeline_mode = #tpu.pipeline_mode<synchronous>, transform_indices = @transform_5, window_bounds = array<i64: 32, 32>}, {pipeline_mode = #tpu.pipeline_mode<synchronous>, transform_indices = @transform_6, window_bounds = array<i64: 1, 32>}, {transform_indices = @transform_7, window_bounds = array<i64: 1, 4, 8, 8>}, {transform_indices = @transform_8, window_bounds = array<i64: 1, 4, 8, 8>}, {transform_indices = @transform_9, window_bounds = array<i64: 1, 4, 8, 8>}]} {
    %c0 = arith.constant 0 : index
    %c0_0 = arith.constant 0 : index
    %c0_1 = arith.constant 0 : index
    %0 = vector.load %arg2[%c0, %c0_0, %c0_1] : memref<1x8x32xf32, #tpu.memory_space<vmem>>, vector<1x8x32xf32>
    %1 = vector.shape_cast %0 : vector<1x8x32xf32> to vector<8x32xf32>
    %2 = arith.truncf %1 : vector<8x32xf32> to vector<8x32xbf16>
    %c0_2 = arith.constant 0 : index
    %c0_3 = arith.constant 0 : index
    %3 = vector.load %arg3[%c0_2, %c0_3] : memref<32x32xbf16, #tpu.memory_space<vmem>>, vector<32x32xbf16>
    %cst = arith.constant dense<0.000000e+00> : vector<8x32xf32>
    %4 = tpu.matmul %2, %3, %cst {dimension_numbers = #tpu.dot_dimension_numbers<[1], [0], [0], [1], [0, 0, 1, 1], [], []>} : vector<8x32xbf16>, vector<32x32xbf16>, vector<8x32xf32> -> vector<8x32xf32>
    %c0_4 = arith.constant 0 : index
    %c0_5 = arith.constant 0 : index
    %5 = vector.load %arg4[%c0_4, %c0_5] : memref<1x32xf32, #tpu.memory_space<vmem>>, vector<1x32xf32>
    %6 = vector.broadcast %5 : vector<1x32xf32> to vector<8x32xf32>
    %7 = arith.addf %4, %6 : vector<8x32xf32>
    %8 = arith.truncf %7 : vector<8x32xf32> to vector<8x32xbf16>
    %9 = vector.extract_strided_slice %8 {offsets = [0, 0], sizes = [8, 8], strides = [1, 1]} : vector<8x32xbf16> to vector<8x8xbf16>
    %c0_6 = arith.constant 0 : index
    %c0_7 = arith.constant 0 : index
    %c0_8 = arith.constant 0 : index
    %c0_9 = arith.constant 0 : index
    %10 = vector.load %arg9[%c0_6, %c0_7, %c0_8, %c0_9] : memref<1x4x8x8xbf16, #tpu.memory_space<vmem>>, vector<1x1x8x8xbf16>
    %11 = vector.shape_cast %10 : vector<1x1x8x8xbf16> to vector<8x8xbf16>
    %12 = vector.shape_cast %9 : vector<8x8xbf16> to vector<1x1x8x8xbf16>
    tpu.vector_store %arg9[%c0_6, %c0_7, %c0_8, %c0_9], %12 {strides = array<i32>} : memref<1x4x8x8xbf16, #tpu.memory_space<vmem>>, vector<1x1x8x8xbf16>,
    %13 = vector.extract_strided_slice %8 {offsets = [0, 8], sizes = [8, 8], strides = [1, 1]} : vector<8x32xbf16> to vector<8x8xbf16>
    %c0_10 = arith.constant 0 : index
    %c1 = arith.constant 1 : index
    %c0_11 = arith.constant 0 : index
    %c0_12 = arith.constant 0 : index
    %14 = vector.load %arg9[%c0_10, %c1, %c0_11, %c0_12] : memref<1x4x8x8xbf16, #tpu.memory_space<vmem>>, vector<1x1x8x8xbf16>
    %15 = vector.shape_cast %14 : vector<1x1x8x8xbf16> to vector<8x8xbf16>
    %16 = vector.shape_cast %13 : vector<8x8xbf16> to vector<1x1x8x8xbf16>
    tpu.vector_store %arg9[%c0_10, %c1, %c0_11, %c0_12], %16 {strides = array<i32>} : memref<1x4x8x8xbf16, #tpu.memory_space<vmem>>, vector<1x1x8x8xbf16>,
    %17 = vector.extract_strided_slice %8 {offsets = [0, 16], sizes = [8, 8], strides = [1, 1]} : vector<8x32xbf16> to vector<8x8xbf16>
    %c0_13 = arith.constant 0 : index
    %c2 = arith.constant 2 : index
    %c0_14 = arith.constant 0 : index
    %c0_15 = arith.constant 0 : index
    %18 = vector.load %arg9[%c0_13, %c2, %c0_14, %c0_15] : memref<1x4x8x8xbf16, #tpu.memory_space<vmem>>, vector<1x1x8x8xbf16>
    %19 = vector.shape_cast %18 : vector<1x1x8x8xbf16> to vector<8x8xbf16>
    %20 = vector.shape_cast %17 : vector<8x8xbf16> to vector<1x1x8x8xbf16>
    tpu.vector_store %arg9[%c0_13, %c2, %c0_14, %c0_15], %20 {strides = array<i32>} : memref<1x4x8x8xbf16, #tpu.memory_space<vmem>>, vector<1x1x8x8xbf16>,
    %21 = vector.extract_strided_slice %8 {offsets = [0, 24], sizes = [8, 8], strides = [1, 1]} : vector<8x32xbf16> to vector<8x8xbf16>
    %c0_16 = arith.constant 0 : index
    %c3 = arith.constant 3 : index
    %c0_17 = arith.constant 0 : index
    %c0_18 = arith.constant 0 : index
    %22 = vector.load %arg9[%c0_16, %c3, %c0_17, %c0_18] : memref<1x4x8x8xbf16, #tpu.memory_space<vmem>>, vector<1x1x8x8xbf16>
    %23 = vector.shape_cast %22 : vector<1x1x8x8xbf16> to vector<8x8xbf16>
    %24 = vector.shape_cast %21 : vector<8x8xbf16> to vector<1x1x8x8xbf16>
    tpu.vector_store %arg9[%c0_16, %c3, %c0_17, %c0_18], %24 {strides = array<i32>} : memref<1x4x8x8xbf16, #tpu.memory_space<vmem>>, vector<1x1x8x8xbf16>,
    %c0_19 = arith.constant 0 : index
    %c0_20 = arith.constant 0 : index
    %25 = vector.load %arg5[%c0_19, %c0_20] : memref<32x32xbf16, #tpu.memory_space<vmem>>, vector<32x32xbf16>
    %cst_21 = arith.constant dense<0.000000e+00> : vector<8x32xf32>
    %26 = tpu.matmul %2, %25, %cst_21 {dimension_numbers = #tpu.dot_dimension_numbers<[1], [0], [0], [1], [0, 0, 1, 1], [], []>} : vector<8x32xbf16>, vector<32x32xbf16>, vector<8x32xf32> -> vector<8x32xf32>
    %c0_22 = arith.constant 0 : index
    %c0_23 = arith.constant 0 : index
    %27 = vector.load %arg6[%c0_22, %c0_23] : memref<1x32xf32, #tpu.memory_space<vmem>>, vector<1x32xf32>
    %28 = vector.broadcast %27 : vector<1x32xf32> to vector<8x32xf32>
    %29 = arith.addf %26, %28 : vector<8x32xf32>
    %30 = arith.truncf %29 : vector<8x32xf32> to vector<8x32xbf16>
    %31 = vector.extract_strided_slice %30 {offsets = [0, 0], sizes = [8, 8], strides = [1, 1]} : vector<8x32xbf16> to vector<8x8xbf16>
    %c0_24 = arith.constant 0 : index
    %c0_25 = arith.constant 0 : index
    %c0_26 = arith.constant 0 : index
    %c0_27 = arith.constant 0 : index
    %32 = vector.load %arg10[%c0_24, %c0_25, %c0_26, %c0_27] : memref<1x4x8x8xbf16, #tpu.memory_space<vmem>>, vector<1x1x8x8xbf16>
    %33 = vector.shape_cast %32 : vector<1x1x8x8xbf16> to vector<8x8xbf16>
    %34 = vector.shape_cast %31 : vector<8x8xbf16> to vector<1x1x8x8xbf16>
    tpu.vector_store %arg10[%c0_24, %c0_25, %c0_26, %c0_27], %34 {strides = array<i32>} : memref<1x4x8x8xbf16, #tpu.memory_space<vmem>>, vector<1x1x8x8xbf16>,
    %35 = vector.extract_strided_slice %30 {offsets = [0, 8], sizes = [8, 8], strides = [1, 1]} : vector<8x32xbf16> to vector<8x8xbf16>
    %c0_28 = arith.constant 0 : index
    %c1_29 = arith.constant 1 : index
    %c0_30 = arith.constant 0 : index
    %c0_31 = arith.constant 0 : index
    %36 = vector.load %arg10[%c0_28, %c1_29, %c0_30, %c0_31] : memref<1x4x8x8xbf16, #tpu.memory_space<vmem>>, vector<1x1x8x8xbf16>
    %37 = vector.shape_cast %36 : vector<1x1x8x8xbf16> to vector<8x8xbf16>
    %38 = vector.shape_cast %35 : vector<8x8xbf16> to vector<1x1x8x8xbf16>
    tpu.vector_store %arg10[%c0_28, %c1_29, %c0_30, %c0_31], %38 {strides = array<i32>} : memref<1x4x8x8xbf16, #tpu.memory_space<vmem>>, vector<1x1x8x8xbf16>,
    %39 = vector.extract_strided_slice %30 {offsets = [0, 16], sizes = [8, 8], strides = [1, 1]} : vector<8x32xbf16> to vector<8x8xbf16>
    %c0_32 = arith.constant 0 : index
    %c2_33 = arith.constant 2 : index
    %c0_34 = arith.constant 0 : index
    %c0_35 = arith.constant 0 : index
    %40 = vector.load %arg10[%c0_32, %c2_33, %c0_34, %c0_35] : memref<1x4x8x8xbf16, #tpu.memory_space<vmem>>, vector<1x1x8x8xbf16>
    %41 = vector.shape_cast %40 : vector<1x1x8x8xbf16> to vector<8x8xbf16>
    %42 = vector.shape_cast %39 : vector<8x8xbf16> to vector<1x1x8x8xbf16>
    tpu.vector_store %arg10[%c0_32, %c2_33, %c0_34, %c0_35], %42 {strides = array<i32>} : memref<1x4x8x8xbf16, #tpu.memory_space<vmem>>, vector<1x1x8x8xbf16>,
    %43 = vector.extract_strided_slice %30 {offsets = [0, 24], sizes = [8, 8], strides = [1, 1]} : vector<8x32xbf16> to vector<8x8xbf16>
    %c0_36 = arith.constant 0 : index
    %c3_37 = arith.constant 3 : index
    %c0_38 = arith.constant 0 : index
    %c0_39 = arith.constant 0 : index
    %44 = vector.load %arg10[%c0_36, %c3_37, %c0_38, %c0_39] : memref<1x4x8x8xbf16, #tpu.memory_space<vmem>>, vector<1x1x8x8xbf16>
    %45 = vector.shape_cast %44 : vector<1x1x8x8xbf16> to vector<8x8xbf16>
    %46 = vector.shape_cast %43 : vector<8x8xbf16> to vector<1x1x8x8xbf16>
    tpu.vector_store %arg10[%c0_36, %c3_37, %c0_38, %c0_39], %46 {strides = array<i32>} : memref<1x4x8x8xbf16, #tpu.memory_space<vmem>>, vector<1x1x8x8xbf16>,
    %c0_40 = arith.constant 0 : index
    %c0_41 = arith.constant 0 : index
    %47 = vector.load %arg7[%c0_40, %c0_41] : memref<32x32xbf16, #tpu.memory_space<vmem>>, vector<32x32xbf16>
    %cst_42 = arith.constant dense<0.000000e+00> : vector<8x32xf32>
    %48 = tpu.matmul %2, %47, %cst_42 {dimension_numbers = #tpu.dot_dimension_numbers<[1], [0], [0], [1], [0, 0, 1, 1], [], []>} : vector<8x32xbf16>, vector<32x32xbf16>, vector<8x32xf32> -> vector<8x32xf32>
    %c0_43 = arith.constant 0 : index
    %c0_44 = arith.constant 0 : index
    %49 = vector.load %arg8[%c0_43, %c0_44] : memref<1x32xf32, #tpu.memory_space<vmem>>, vector<1x32xf32>
    %50 = vector.broadcast %49 : vector<1x32xf32> to vector<8x32xf32>
    %51 = arith.addf %48, %50 : vector<8x32xf32>
    %52 = arith.truncf %51 : vector<8x32xf32> to vector<8x32xbf16>
    %53 = vector.extract_strided_slice %52 {offsets = [0, 0], sizes = [8, 8], strides = [1, 1]} : vector<8x32xbf16> to vector<8x8xbf16>
    %c0_45 = arith.constant 0 : index
    %c0_46 = arith.constant 0 : index
    %c0_47 = arith.constant 0 : index
    %c0_48 = arith.constant 0 : index
    %54 = vector.load %arg11[%c0_45, %c0_46, %c0_47, %c0_48] : memref<1x4x8x8xbf16, #tpu.memory_space<vmem>>, vector<1x1x8x8xbf16>
    %55 = vector.shape_cast %54 : vector<1x1x8x8xbf16> to vector<8x8xbf16>
    %56 = vector.shape_cast %53 : vector<8x8xbf16> to vector<1x1x8x8xbf16>
    tpu.vector_store %arg11[%c0_45, %c0_46, %c0_47, %c0_48], %56 {strides = array<i32>} : memref<1x4x8x8xbf16, #tpu.memory_space<vmem>>, vector<1x1x8x8xbf16>,
    %57 = vector.extract_strided_slice %52 {offsets = [0, 8], sizes = [8, 8], strides = [1, 1]} : vector<8x32xbf16> to vector<8x8xbf16>
    %c0_49 = arith.constant 0 : index
    %c1_50 = arith.constant 1 : index
    %c0_51 = arith.constant 0 : index
    %c0_52 = arith.constant 0 : index
    %58 = vector.load %arg11[%c0_49, %c1_50, %c0_51, %c0_52] : memref<1x4x8x8xbf16, #tpu.memory_space<vmem>>, vector<1x1x8x8xbf16>
    %59 = vector.shape_cast %58 : vector<1x1x8x8xbf16> to vector<8x8xbf16>
    %60 = vector.shape_cast %57 : vector<8x8xbf16> to vector<1x1x8x8xbf16>
    tpu.vector_store %arg11[%c0_49, %c1_50, %c0_51, %c0_52], %60 {strides = array<i32>} : memref<1x4x8x8xbf16, #tpu.memory_space<vmem>>, vector<1x1x8x8xbf16>,
    %61 = vector.extract_strided_slice %52 {offsets = [0, 16], sizes = [8, 8], strides = [1, 1]} : vector<8x32xbf16> to vector<8x8xbf16>
    %c0_53 = arith.constant 0 : index
    %c2_54 = arith.constant 2 : index
    %c0_55 = arith.constant 0 : index
    %c0_56 = arith.constant 0 : index
    %62 = vector.load %arg11[%c0_53, %c2_54, %c0_55, %c0_56] : memref<1x4x8x8xbf16, #tpu.memory_space<vmem>>, vector<1x1x8x8xbf16>
    %63 = vector.shape_cast %62 : vector<1x1x8x8xbf16> to vector<8x8xbf16>
    %64 = vector.shape_cast %61 : vector<8x8xbf16> to vector<1x1x8x8xbf16>
    tpu.vector_store %arg11[%c0_53, %c2_54, %c0_55, %c0_56], %64 {strides = array<i32>} : memref<1x4x8x8xbf16, #tpu.memory_space<vmem>>, vector<1x1x8x8xbf16>,
    %65 = vector.extract_strided_slice %52 {offsets = [0, 24], sizes = [8, 8], strides = [1, 1]} : vector<8x32xbf16> to vector<8x8xbf16>
    %c0_57 = arith.constant 0 : index
    %c3_58 = arith.constant 3 : index
    %c0_59 = arith.constant 0 : index
    %c0_60 = arith.constant 0 : index
    %66 = vector.load %arg11[%c0_57, %c3_58, %c0_59, %c0_60] : memref<1x4x8x8xbf16, #tpu.memory_space<vmem>>, vector<1x1x8x8xbf16>
    %67 = vector.shape_cast %66 : vector<1x1x8x8xbf16> to vector<8x8xbf16>
    %68 = vector.shape_cast %65 : vector<8x8xbf16> to vector<1x1x8x8xbf16>
    tpu.vector_store %arg11[%c0_57, %c3_58, %c0_59, %c0_60], %68 {strides = array<i32>} : memref<1x4x8x8xbf16, #tpu.memory_space<vmem>>, vector<1x1x8x8xbf16>,
    return
  }
  func.func @transform_0(%arg0: i32, %arg1: i32) -> (i32, i32, i32) {
    %c0_i32 = arith.constant 0 : i32
    %c0_i32_0 = arith.constant 0 : i32
    return %arg0, %arg1, %c0_i32 : i32, i32, i32
  }
  func.func @transform_1(%arg0: i32, %arg1: i32) -> (i32, i32) {
    %c0_i32 = arith.constant 0 : i32
    %c0_i32_0 = arith.constant 0 : i32
    %c0_i32_1 = arith.constant 0 : i32
    return %c0_i32, %c0_i32_0 : i32, i32
  }
  func.func @transform_2(%arg0: i32, %arg1: i32) -> (i32, i32) {
    %c0_i32 = arith.constant 0 : i32
    %c0_i32_0 = arith.constant 0 : i32
    %c0_i32_1 = arith.constant 0 : i32
    return %c0_i32, %c0_i32_0 : i32, i32
  }
  func.func @transform_3(%arg0: i32, %arg1: i32) -> (i32, i32) {
    %c0_i32 = arith.constant 0 : i32
    %c0_i32_0 = arith.constant 0 : i32
    %c0_i32_1 = arith.constant 0 : i32
    return %c0_i32, %c0_i32_0 : i32, i32
  }
  func.func @transform_4(%arg0: i32, %arg1: i32) -> (i32, i32) {
    %c0_i32 = arith.constant 0 : i32
    %c0_i32_0 = arith.constant 0 : i32
    %c0_i32_1 = arith.constant 0 : i32
    return %c0_i32, %c0_i32_0 : i32, i32
  }
  func.func @transform_5(%arg0: i32, %arg1: i32) -> (i32, i32) {
    %c0_i32 = arith.constant 0 : i32
    %c0_i32_0 = arith.constant 0 : i32
    %c0_i32_1 = arith.constant 0 : i32
    return %c0_i32, %c0_i32_0 : i32, i32
  }
  func.func @transform_6(%arg0: i32, %arg1: i32) -> (i32, i32) {
    %c0_i32 = arith.constant 0 : i32
    %c0_i32_0 = arith.constant 0 : i32
    %c0_i32_1 = arith.constant 0 : i32
    return %c0_i32, %c0_i32_0 : i32, i32
  }
  func.func @transform_7(%arg0: i32, %arg1: i32) -> (i32, i32, i32, i32) {
    %c0_i32 = arith.constant 0 : i32
    %c0_i32_0 = arith.constant 0 : i32
    %c0_i32_1 = arith.constant 0 : i32
    return %arg0, %c0_i32, %arg1, %c0_i32_0 : i32, i32, i32, i32
  }
  func.func @transform_8(%arg0: i32, %arg1: i32) -> (i32, i32, i32, i32) {
    %c0_i32 = arith.constant 0 : i32
    %c0_i32_0 = arith.constant 0 : i32
    %c0_i32_1 = arith.constant 0 : i32
    return %arg0, %c0_i32, %arg1, %c0_i32_0 : i32, i32, i32, i32
  }
  func.func @transform_9(%arg0: i32, %arg1: i32) -> (i32, i32, i32, i32) {
    %c0_i32 = arith.constant 0 : i32
    %c0_i32_0 = arith.constant 0 : i32
    %c0_i32_1 = arith.constant 0 : i32
    return %arg0, %c0_i32, %arg1, %c0_i32_0 : i32, i32, i32, i32
  }
}

</mosaic_0001>

<bundles_post_ra>
// kernel: tpu_custom_call.1
= control target key start
LH: loop header
LB: loop body
LE: loop exit
PB: predicated region body
PF: predicated region fallthrough
CT: control target
= control target key end

     0   :  { %s1634_s0 = inlined_call_operand.hbm [shape: f32[2,8,32], index: 0, kind: input, shape index: {}]   ;;  %s1635_s1 = inlined_call_operand.hbm [shape: bf16[32,32], index: 1, kind: input, shape index: {}]   ;;  %s1636_s2 = inlined_call_operand.vmem [shape: f32[1,32], index: 2, kind: input, shape index: {}]   ;;  %s1637_s3 = inlined_call_operand.hbm [shape: bf16[32,32], index: 3, kind: input, shape index: {}]   ;;  %s1638_s4 = inlined_call_operand.vmem [shape: f32[1,32], index: 4, kind: input, shape index: {}]   ;;  %s1639_s5 = inlined_call_operand.hbm [shape: bf16[32,32], index: 5, kind: input, shape index: {}]   ;;  %s1640_s6 = inlined_call_operand.vmem [shape: f32[1,32], index: 6, kind: input, shape index: {}]   ;;  %s1641_s7 = inlined_call_operand.hbm [shape: bf16[2,4,8,8], index: 7, kind: output, shape index: {0}]   ;;  %s1642_s8 = inlined_call_operand.hbm [shape: bf16[2,4,8,8], index: 8, kind: output, shape index: {1}]   ;;  %s1643_s9 = inlined_call_operand.hbm [shape: bf16[2,4,8,8], index: 9, kind: output, shape index: {2}]  }
   0x1   :  { %1648 = sst [smem:[#allocation21_spill]] %s1634_s0 }
   0x2   :  { %1649 = sst [smem:[#allocation22_spill]] %s1635_s1 }
   0x3   :  { %1650 = sst [smem:[#allocation23_spill]] %s1636_s2 }
   0x4   :  { %1651 = sst [smem:[#allocation24_spill]] %s1637_s3 }
   0x5   :  { %1652 = sst [smem:[#allocation25_spill]] %s1638_s4 }
   0x6   :  { %1653 = sst [smem:[#allocation26_spill]] %s1639_s5 }
   0x7   :  { %15 = vsyncpa [#allocation3], 0 }
   0x8   :  { %17 = vsyncpa [#allocation3 + $0x1], 0 }
   0x9   :  { %18 = vsyncpa [#allocation6], 0 }
   0xa   :  { %19 = vsyncpa [#allocation9], 0 }
   0xb   :  { %20 = vsyncpa [#allocation4], 0 }
   0xc   :  { %22 = vsyncpa [#allocation4 + $0x1], 0 }
   0xd   :  { %23 = vsyncpa [#allocation12], 0 }
   0xe   :  { %25 = vsyncpa [#allocation12 + $0x1], 0  ;;  %s1361_s30 = smov 0   ;;  %s1363_s10 = smov 0  }
   0xf   :  { %s1365_s11 = smov 0   ;;  %s1367_s12 = smov 0  }
  0x10   :  { %s1369_s13 = smov 0   ;;  %s1371_s14 = smov 0  }
  0x11 LB: > { %s1392_s15 = sadd.s32 4294967295, %s1299_s14   ;;  %p845_p0 = scmp.ge.s32.totalorder %s1299_s14, 1  ;;  %s1299_s14 = sphi %s1371_s14, %s31_s14   ;;  %s1295_s13 = sphi %s1369_s13, %s1678_s13   ;;  %s1291_s12 = sphi %s1367_s12, %s1677_s12   ;;  %s1287_s11 = sphi %s1365_s11, %s1676_s11   ;;  %s1283_s10 = sphi %s1363_s10, %s1675_s10   ;;  %s1279_s30 = sphi %s1361_s30, %s1674_s30  }
  0x12   : > { %p66_p1 = scmp.eq.s32.totalorder %s1392_s15, 0  ;;  %p286_p2 = scmp.lt.s32.totalorder %s1299_s14, 3 }
  0x13   : > { %s1654_s1 = sld [smem:[#allocation22_spill]]  ;;  %s1301_s20 = smov [#allocation5]  }
  0x14   : > { %p1400_p3 = pnand %p845_p0, %p286_p2  ;;  %s299_s21 = sshll.u32 %s1301_s20, 4  ;;  %s300_s21 = int_to_ptr.vmem [resolvable:$true] %s299_s21 }
  0x15   : > { %p849_p6 = scmp.ge.s32.totalorder %s1299_s14, 2  ;;  %s1657_s3 = sld [smem:[#allocation24_spill]] }
  0x16   : > { %p936_p4 = pneg %p1400_p3  ;;  %s1302_s26 = smov 64  }
  0x17   : > { %s1303_s27 = smov 4   ;;  %s1304_s28 = smov [#allocation7]  }
  0x18   : > { %p1408_p5 = pnand %p936_p4, %p66_p1  ;;  %s316_s29 = sshll.u32 %s1304_s28, 4  ;;  %s317_s29 = int_to_ptr.vmem [resolvable:$true] %s316_s29 }
  0x19   : > { %s297_s18 = sshll.u32 %s1654_s1, 4  ;;  %s1658_s5 = sld [smem:[#allocation26_spill]]  ;;  %s298_s18 = int_to_ptr.hbm [resolvable:$true] %s297_s18 }
  0x1a   : > { %939 = dma.hbm_to_vmem [thread:$0]  (!%p1408_p5), %s298_s18, 256, %s300_s21, [#allocation6], %s1302_s26, %s1302_s26, %s1303_s27  }
  0x1b   : > { %s314_s25 = sshll.u32 %s1657_s3, 4  ;;  %s1305_s23 = smov [#allocation8]   ;;  %s315_s25 = int_to_ptr.hbm [resolvable:$true] %s314_s25 }
  0x1c   : > { %942 = dma.hbm_to_vmem [thread:$0]  (!%p1408_p5), %s315_s25, 256, %s317_s29, [#allocation6], %s1302_s26, %s1302_s26, %s1303_s27  }
  0x1d   : > { %s333_s24 = sshll.u32 %s1305_s23, 4  ;;  %s1644_s18 = sadd.s32 4294967294, %s1299_s14   ;;  %s334_s24 = int_to_ptr.vmem [resolvable:$true] %s333_s24 }
  0x1e   : > { %s43_s21 = sadd.s32 1, %s1295_s13  ;;  %s52_s28 = sadd.s32 1, %s1287_s11 }
  0x1f   : > { %s331_s20 = sshll.u32 %s1658_s5, 4  ;;  %p45_p7 = scmp.ge.s32.totalorder %s43_s21, 2  ;;  %s332_s20 = int_to_ptr.hbm [resolvable:$true] %s331_s20 }
  0x20   : > { %945 = dma.hbm_to_vmem [thread:$0]  (!%p1408_p5), %s332_s20, 256, %s334_s24, [#allocation9], %s1302_s26, %s1302_s26, %s1303_s27  }
  0x21   : > { %p59_p8 = scmp.ne.s32.totalorder %s1287_s11, %s1283_s10  ;;  %p60_p9 = scmp.eq.s32.totalorder %s1299_s14, 0 }
  0x22   : > { %p65_p10 = scmp.ne.s32.totalorder %s1283_s10, %s1279_s30  ;;  %s1680_s21 = smov (%p45_p7, %s43_s21), 0 }
  0x23   : > { %1659 = sst [smem:[#allocation19_spill]] %s1680_s21  ;;  %p1435_p11 = por %p60_p9, %p59_p8 }
  0x24   : > { %p1441_p12 = por %p66_p1, %p65_p10  ;;  %s47_s26 = ssub.s32 %s1295_s13, %s1680_s21 }
  0x25   : > { %p217_p13 = scmp.eq.s32.totalorder %s1392_s15, 1  ;;  %p50_p0 = scmp.eq.s32.totalorder %s47_s26, 0 }
  0x26   : > { %p223_p2 = scmp.eq.s32.totalorder %s1644_s18, 1  ;;  %p963_p5 = scmp.lt.s32.totalorder %s1299_s14, 2 }
  0x27   : > { %p1450_p4 = por %p217_p13, %p59_p8  ;;  %s350_s17 = sand.u32 1, %s1287_s11  }
  0x28   : > { %s1456_s29 = scalar_select %p50_p0, %s1287_s11, %s52_s28  }
  0x29   : > { %p1458_p7 = por %p223_p2, %p65_p10  ;;  %s850_s20 = sshll.u32 %s350_s17, 3 }
  0x2a   : > { %s851_s23 = sshll.u32 %s1295_s13, 3  ;;  %s1664_s0 = sld [smem:[#allocation21_spill]] }
  0x2b   : > { %s354_s3 = scalar_lea.vmem [#allocation2], %s850_s20  ;;  %p947_p8 = pnand %p963_p5, %p1435_p11 }
  0x2c   : > { %s363_s18 = sshll.u32 %s354_s3, 4  ;;  %s351_s28 = scalar_lea.sflag [#allocation3], %s350_s17  ;;  %s364_s18 = int_to_ptr.vmem [resolvable:$true] %s363_s18 }
  0x2e   : > { %372 = sbr.rel (%p1400_p3) target bundleno = 362 (0x16a), region = 48 }
  0x30   : > { %s359_s26 = scalar_lea.hbm %s1664_s0, %s851_s23 }
  0x31   : > { %s361_s5 = sshll.u32 %s359_s26, 4  ;;  %s362_s5 = int_to_ptr.hbm [resolvable:$true] %s361_s5 }
  0x32   : > { %949 = dma.hbm_to_vmem [thread:$0]  (!%p947_p8), %s362_s5, 128, %s364_s18, %s351_s28  }
  0x33   : > { %s1472_s21 = sand.u32 1, %s1283_s10  }
  0x34   : > { %s853_s1 = sshll.u32 %s1472_s21, 3  ;;  %s375_s23 = scalar_lea.sflag [#allocation3], %s1472_s21 }
  0x35   : > { %s378_s20 = scalar_lea.vmem [#allocation2], %s853_s1 }
  0x36   : > { %1258 = dma.done.wait (%p1441_p12), %s375_s23, 128  }
  0x37   : > { %1260 = vsyncadd (%p1441_p12), %s375_s23, 4294967168 }
  0x38   : > { %1262 = dma.done.wait (%p66_p1), [#allocation6], 512  }
  0x39   : > { %1264 = vsyncadd (%p66_p1), [#allocation6], 4294966784 }
  0x3a   : > { %1266 = dma.done.wait (%p66_p1), [#allocation9], 256  }
  0x3b   : > { %1268 = vsyncadd (%p66_p1), [#allocation9], 4294967040  ;;  %v908_v0 = vld [vmem:[#allocation5 + $0x8] sm:$0xff]  ;;  %v910_v1 = vld [vmem:[#allocation7 + $0x8] sm:$0xff]  ;;  %vm462_vm0 = vcmask 261120   ;;  %s1665_s2 = sld [smem:[#allocation23_spill]] }
  0x3c   : > { %v912_v2 = vld [vmem:[#allocation8 + $0x8] sm:$0xff]  ;;  %v907_v3 = vld [vmem:[#allocation5] sm:$0xff]  ;;  %472 = vmatpush.bf16.msra.mxu0 %v908_v0  ;;  %524 = vmatpush.bf16.msra.mxu1 %v910_v1  ;;  %v909_v4 = vld [vmem:[#allocation7] sm:$0xff]  ;;  %s1666_s4 = sld [smem:[#allocation25_spill]]  ;;  %s857_s25 = sshll.u32 %s1472_s21, 4  ;;  %vm480_vm1 = vcmask 60416  }
  0x3d   : > { %v440_v5 = vld [vmem:[%s378_s20] sm:$0xff]  ;;  %575 = vmatpush.bf16.msra.mxu2 %v912_v2  ;;  %v911_v6 = vld [vmem:[#allocation8] sm:$0xff]  ;;  %s1498_s24 = scalar_lea.vmem [#allocation10], %s857_s25  ;;  %s1306_s26 = smov 104  }
  0x3e   : > { %v441_v7 = vpack.c.bf16 %v440_v5, %v440_v5  ;;  %v1028_v16 = vld [vmem:[%s1640_s6] ss:$0 sm:$0xff]  ;;  %s1307_s28 = smov 120   ;;  %s1502_s1 = scalar_lea.vmem [#allocation11], %s857_s25 }
  0x3f   : > { %s1308_s23 = smov 112   ;;  %s1506_s20 = scalar_lea.vmem [#allocation13], %s857_s25 }
  0x40   : > { %473 = vmatpush.bf16.msra.mxu0 %v907_v3  ;;  %525 = vmatpush.bf16.msra.mxu1 %v909_v4  ;;  %s1517_s3 = sshll.u32 %s1291_s12, 4  ;;  %s624_s5 = sshll.u32 %s1498_s24, 4  ;;  %s1534_s5 = int_to_ptr.vmem [resolvable:$true] %s624_s5 }
  0x41   : > { %576 = vmatpush.bf16.msra.mxu2 %v911_v6  ;;  %v1026_v8 = vld [vmem:[%s1665_s2] ss:$0 sm:$0xff]  ;;  %s641_s25 = scalar_lea.hbm %s1642_s8, %s1517_s3  ;;  %s642_s22 = sshll.u32 %s1502_s1, 4  ;;  %s643_s22 = int_to_ptr.vmem [resolvable:$true] %s642_s22 }
  0x42   : > { %v1027_v9 = vld [vmem:[%s1666_s4] ss:$0 sm:$0xff] }
  0x43   : > { %868 = vmatmul.msk.bf16.vlgmr.msra.gmra.mxu0 %vm462_vm0, %v441_v7  ;;  %880 = vmatmul.msk.bf16.vlgmr.msra.gmra.mxu1 %vm462_vm0, %v441_v7 }
  0x44   : > { %892 = vmatmul.msk.bf16.vlgmr.msra.gmra.mxu2 %vm462_vm0, %v441_v7 }
  0xc0   : > { %v475_v10 = vpop.f32.mrf.mxu0  ;;  %v527_v11 = vpop.f32.mrf.mxu1 }
  0xc1   : > { %v476_v12 = vadd.f32 %v1026_v8, %v475_v10  ;;  %v528_v13 = vadd.f32 %v1027_v9, %v527_v11 }
  0xc3   : > { %v479_v14 = vpack.c.bf16 %v476_v12, %v476_v12  ;;  %v531_v15 = vpack.c.bf16 %v528_v13, %v528_v13 }
  0xc5   : > { %481 = vst.msk [vmem:[%s1498_s24] sm:$0xf] %vm480_vm1, %v479_v14  ;;  %544 = vrot.lane.b32.xlu1 %v531_v15, %s1306_s26  ;;  %534 = vrot.lane.b32.xlu0 %v531_v15, %s1307_s28 }
  0xc6   : > { %532 = vst.msk [vmem:[%s1502_s1] sm:$0xf] %vm480_vm1, %v531_v15  ;;  %488 = vrot.lane.b32.xlu2 %v479_v14, %s1308_s23 }
  0xc7   : > { %v578_v17 = vpop.f32.mrf.mxu2 }
  0xc8   : > { %v477_v18 = vpop.f32.mrf.mxu0  ;;  %v529_v19 = vpop.f32.mrf.mxu1  ;;  %v579_v20 = vadd.f32 %v1028_v16, %v578_v17 }
  0xca   : > { %v582_v21 = vpack.c.bf16 %v579_v20, %v579_v20 }
  0xcc   : > { %583 = vst.msk [vmem:[%s1506_s20] sm:$0xf] %vm480_vm1, %v582_v21 }
  0xcd   : > { %539 = vrot.lane.b32.xlu0 %v531_v15, %s1308_s23  ;;  %483 = vrot.lane.b32.xlu1 %v479_v14, %s1307_s28 }
  0xce   : > { %493 = vrot.lane.b32.xlu2 %v479_v14, %s1306_s26 }
  0xcf   : > { %v580_v22 = vpop.f32.mrf.mxu2 }
  0xd5   : > { %585 = vrot.lane.b32.xlu0 %v582_v21, %s1307_s28  ;;  %590 = vrot.lane.b32.xlu1 %v582_v21, %s1308_s23  ;;  %s605_s28 = sand.u32 1, %s1392_s15   ;;  %s1536_s23 = sshll.u32 %s641_s25, 4  ;;  %s645_s23 = int_to_ptr.hbm [resolvable:$true] %s1536_s23 }
  0xd6   : > { %595 = vrot.lane.b32.xlu2 %v582_v21, %s1306_s26  ;;  %s623_s26 = scalar_lea.hbm %s1641_s7, %s1517_s3  ;;  %s1550_s17 = scalar_lea.sflag [#allocation12], %s605_s28 }
  0xd7   : > { %s1538_s0 = sshll.u32 %s623_s26, 4  ;;  %s1163_s25 = sshra.s32 %s645_s23, 4  ;;  %s1164_s25 = int_to_ptr.hbm [resolvable:$true] %s1163_s25 }
  0xd8   : > { %1667 = sst [smem:[#allocation20_spill]] %s1538_s0  ;;  %s1165_s12 = scalar_lea.hbm %s1164_s25, 16 }
  0xd9   : > { %p1166_p1 = scmp.ne.s32.totalorder %s1164_s25, %s1165_s12  ;;  %p1170_p10 = scmp.lt.s32.totalorder %s1164_s25, %s1642_s8 }
  0xdb   : > { %p1167_p3 = pnand %p1166_p1, %p1450_p4 }
  0xdd   : > { %p1168_p9 = pneg %p1167_p3 }
 0x120   : > { %v489_v23 = vpop.permute.xlu2 %488 }
 0x121   : > { %870 = vst.msk [vmem:[%s1498_s24 + $0x8] sm:$0xf] %vm480_vm1, %v489_v23 }
 0x128   : > { %v494_v24 = vpop.permute.xlu2 %493 }
 0x129   : > { %871 = vst.msk [vmem:[%s1498_s24 + $0xc] sm:$0xf] %vm480_vm1, %v494_v24 }
 0x130   : > { %v596_v25 = vpop.permute.xlu2 %595 }
 0x131   : > { %895 = vst.msk [vmem:[%s1506_s20 + $0xc] sm:$0xf] %vm480_vm1, %v596_v25 }
 0x137   : > { %v545_v26 = vpop.permute.xlu1 %544  ;;  %v535_v27 = vpop.permute.xlu0 %534 }
 0x138   : > { %883 = vst.msk [vmem:[%s1502_s1 + $0xc] sm:$0xf] %vm480_vm1, %v545_v26 }
 0x139   : > { %881 = vst.msk [vmem:[%s1502_s1 + $0x4] sm:$0xf] %vm480_vm1, %v535_v27 }
 0x13f   : > { %v540_v28 = vpop.permute.xlu0 %539  ;;  %v484_v29 = vpop.permute.xlu1 %483 }
 0x140   : > { %882 = vst.msk [vmem:[%s1502_s1 + $0x8] sm:$0xf] %vm480_vm1, %v540_v28  ;;  %s1169_s1 = scalar_lea.hbm %s1642_s8, 32 }
 0x141   : > { %869 = vst.msk [vmem:[%s1498_s24 + $0x4] sm:$0xf] %vm480_vm1, %v484_v29  ;;  %p1171_p11 = scmp.lt.s32.totalorder %s1169_s1, %s1165_s12 }
 0x143   : > { %p1172_p12 = por %p1171_p11, %p1170_p10 }
 0x145   : > { %p1173_p13 = pnand %p1172_p12, %p1168_p9 }
 0x147   : > { %1176 = shalt.err (!%p1173_p13)
}
 0x148   : > { %s1309_s24 = smov 64   ;;  %s1668_s28 = sld [smem:[#allocation20_spill]] }
 0x149   : > { %s1310_s19 = smov 4   ;;  %s601_s2 = scalar_lea.sflag [#allocation4], %s1472_s21 }
 0x14a   : > { %931 = dma.vmem_to_hbm [thread:$0]  (%p1450_p4), %s643_s22, 256, %s645_s23, %s1550_s17, %s1309_s24, %s1309_s24, %s1310_s19  }
 0x14b   : > { %s1197_s26 = scalar_lea.hbm %s1641_s7, 32 }
 0x14e   : > { %s1669_s15 = int_to_ptr.hbm [resolvable:$true] %s1668_s28 }
 0x14f   : > { %s1191_s0 = sshra.s32 %s1669_s15, 4  ;;  %s1192_s0 = int_to_ptr.hbm [resolvable:$true] %s1191_s0 }
 0x150   : > { %s1193_s4 = scalar_lea.hbm %s1192_s0, 16  ;;  %p1198_p8 = scmp.lt.s32.totalorder %s1192_s0, %s1641_s7 }
 0x151   : > { %p1194_p0 = scmp.ne.s32.totalorder %s1192_s0, %s1193_s4  ;;  %p1199_p1 = scmp.lt.s32.totalorder %s1197_s26, %s1193_s4 }
 0x153   : > { %p1195_p2 = pnand %p1194_p0, %p1450_p4  ;;  %p1200_p3 = por %p1199_p1, %p1198_p8 }
 0x155   : > { %p1196_p5 = pneg %p1195_p2 }
 0x157   : > { %p1201_p9 = pnand %p1200_p3, %p1196_p5 }
 0x159   : > { %1204 = shalt.err (!%p1201_p9)
}
 0x15a   : > { %s1670_s21 = smov %s1669_s15  ;;  %s660_s22 = sshll.u32 %s1506_s20, 4  ;;  %v586_v30 = vpop.permute.xlu0 %585  ;;  %v591_v31 = vpop.permute.xlu1 %590  ;;  %s661_s22 = int_to_ptr.vmem [resolvable:$true] %s660_s22 }
 0x15b   : > { %930 = dma.vmem_to_hbm [thread:$0]  (%p1450_p4), %s1534_s5, 256, %s1670_s21, %s601_s2, %s1309_s24, %s1309_s24, %s1310_s19  }
 0x15c   : > { %s1671_s15 = scalar_lea.hbm %s1643_s9, %s1517_s3  ;;  %893 = vst.msk [vmem:[%s1506_s20 + $0x4] sm:$0xf] %vm480_vm1, %v586_v30  ;;  %s1225_s3 = scalar_lea.hbm %s1643_s9, 32 }
 0x15d   : > { %s662_s0 = sshll.u32 %s1671_s15, 4  ;;  %894 = vst.msk [vmem:[%s1506_s20 + $0x8] sm:$0xf] %vm480_vm1, %v591_v31  ;;  %s663_s0 = int_to_ptr.hbm [resolvable:$true] %s662_s0 }
 0x15e   : > { %s1219_s28 = sshra.s32 %s663_s0, 4  ;;  %s1220_s28 = int_to_ptr.hbm [resolvable:$true] %s1219_s28 }
 0x15f   : > { %s1221_s4 = scalar_lea.hbm %s1220_s28, 16  ;;  %p1226_p13 = scmp.lt.s32.totalorder %s1220_s28, %s1643_s9 }
 0x160   : > { %p1222_p10 = scmp.ne.s32.totalorder %s1220_s28, %s1221_s4  ;;  %p1227_p0 = scmp.lt.s32.totalorder %s1225_s3, %s1221_s4 }
 0x162   : > { %p1223_p11 = pnand %p1222_p10, %p1450_p4  ;;  %p1228_p2 = por %p1227_p0, %p1226_p13 }
 0x164   : > { %p1224_p12 = pneg %p1223_p11 }
 0x166   : > { %p1229_p5 = pnand %p1228_p2, %p1224_p12 }
 0x168   : > { %1232 = shalt.err (!%p1229_p5)
}
 0x169   : > { %932 = dma.vmem_to_hbm [thread:$0]  (%p1450_p4), %s661_s22, 256, %s663_s0, %s1550_s17, %s1309_s24, %s1309_s24, %s1310_s19  }
 0x16a PF: > { %s677_s20 = sand.u32 1, %s1279_s30   ;;  %p951_p8 = pnand %p849_p6, %p1458_p7 }
 0x16b   : > { %s678_s26 = scalar_lea.sflag [#allocation4], %s677_s20 }
 0x16c   : > { %p952_p1 = pneg %p951_p8 }
 0x16e   : > { %1270 = dma.done.wait (%p952_p1), %s678_s26, 256  }
 0x16f   : > { %1272 = vsyncadd (%p952_p1), %s678_s26, 4294967040  ;;  %s1672_s1 = sadd.s32 4294967294, %s1299_s14  }
 0x170   : > { %s687_s27 = sand.u32 1, %s1672_s1  }
 0x171   : > { %s688_s21 = scalar_lea.sflag [#allocation12], %s687_s27 }
 0x172   : > { %1274 = dma.done.wait (%p952_p1), %s688_s21, 512  }
 0x173   : > { %1276 = vsyncadd (%p952_p1), %s688_s21, 4294966784  ;;  %s31_s14 = sadd.s32 1, %s1299_s14   ;;  %s1673_s16 = sld [smem:[#allocation19_spill]] }
 0x174   : > { %p28_p4 = scmp.ge.s32.totalorder %s31_s14, 4   ;;  %s1674_s30 = smov %s1283_s10 }
 0x175   : > { %s1675_s10 = smov %s1287_s11  ;;  %s1676_s11 = smov %s1456_s29 }
 0x176   : > { %s1677_s12 = smov %s1295_s13  ;;  %30 = sbr.rel (!%p28_p4) target bundleno = 17 (0x11), region = 146 }
 0x179   : > { %s1678_s13 = smov %s1673_s16 }
 0x17b   :  { %704 = vsyncpa [#allocation3], 1 }
 0x17c   :  { %706 = vsyncpa [#allocation3 + $0x1], 1 }
 0x17d   :  { %707 = vsyncpa [#allocation6], 1 }
 0x17e   :  { %708 = vsyncpa [#allocation9], 1 }
 0x17f   :  { %709 = vsyncpa [#allocation4], 1 }
 0x180   :  { %711 = vsyncpa [#allocation4 + $0x1], 1 }
 0x181   :  { %712 = vsyncpa [#allocation12], 1 }
 0x182   :  { %714 = vsyncpa [#allocation12 + $0x1], 1 }

</bundles_post_ra>
